<compile_context>
chip_gen: v7x
topology: tpu7x:2x2x1
jax: 0.10.0
libtpu: 0.0.40
codegen_flags: <defaults>
</compile_context>

<pallas_src>
import jax
import jax.numpy as jnp
from jax.experimental import pallas as pl
from jax.experimental.pallas import tpu as pltpu


def _round_up(x, m):
    return ((x + m - 1) // m) * m


def _linear_head_kernel(x_ref, w_ref, b_ref, o_ref):
    # One row-tile of the affine projection on the MXU: o = x @ W + b.
    # f32 accumulation regardless of input dtype; bias add in f32 on the VPU.
    acc = jnp.dot(x_ref[...], w_ref[...], preferred_element_type=jnp.float32)
    o_ref[...] = (acc + b_ref[...]).astype(o_ref.dtype)


def _linear_head_kernel_ktiled(x_ref, w_ref, b_ref, o_ref, acc_ref):
    # Row-tile x K-tile of the affine projection with an f32 VMEM accumulator.
    k = pl.program_id(1)

    @pl.when(k == 0)
    def _():
        acc_ref[...] = jnp.zeros_like(acc_ref)

    acc_ref[...] += jnp.dot(x_ref[...], w_ref[...],
                            preferred_element_type=jnp.float32)

    @pl.when(k == pl.num_programs(1) - 1)
    def _():
        o_ref[...] = (acc_ref[...] + b_ref[...]).astype(o_ref.dtype)


def base_distribution_head(x, w, b, *,
                           compute_dtype=jnp.bfloat16,
                           tk_max=1024,
                           tm_max=8192,
                           vmem_budget_bytes=20 * 1024 * 1024):
    """Affine projection head (the concrete forward of a distribution head).

    x: [B, T, input_dim]
    w: [input_dim, output_dim]
    b: [output_dim]
    returns: [B, T, output_dim]  (in x's original dtype)
    """
    B, T, K = x.shape
    Kw, N = w.shape
    assert K == Kw, "input_dim mismatch"
    M = B * T
    out_dtype = x.dtype

    if compute_dtype is None:
        compute_dtype = x.dtype
    in_itemsize = jnp.dtype(compute_dtype).itemsize
    out_itemsize = jnp.dtype(out_dtype).itemsize
    # Sublane multiple for the row tile: 8 for 32-bit, 16 for bf16, 32 for 8-bit.
    sub = max(8, 32 // in_itemsize, 32 // out_itemsize)

    # Flatten rows (free metadata reshape) and cast compute operands.
    x2d = x.reshape(M, K)
    if x2d.dtype != compute_dtype:
        # TODO(synk): ideally the upstream layer emits compute_dtype directly so
        # this cast fuses into the producer instead of adding an HBM pass.
        x2d = x2d.astype(compute_dtype)
    w_c = w if w.dtype == compute_dtype else w.astype(compute_dtype)
    b2d = b.astype(jnp.float32).reshape(1, N)  # bias added on the f32 accumulator

    # ---- K tiling decision -------------------------------------------------
    # Tile K only when it is large; pick a lane-aligned divisor so no padding
    # of the activation is ever required.  If no clean divisor exists, fall
    # back to whole-K blocks (TM shrinks to respect the VMEM budget).
    tk = None
    if K > tk_max:
        for cand in (1024, 512, 256, 128):
            if cand <= tk_max and K % cand == 0:
                tk = cand
                break
    k_tiled = tk is not None
    k_blk = tk if k_tiled else K

    # ---- TM sizing from the VMEM budget ------------------------------------
    lanes = 128
    kp = _round_up(k_blk, lanes)          # VMEM lane-padded K block width
    np_ = _round_up(N, lanes)             # VMEM lane-padded output width
    per_row = 2 * (kp * in_itemsize + np_ * out_itemsize)   # double-buffered x + out
    if k_tiled:
        per_row += np_ * 4                # f32 accumulator scratch
    tm = max(sub, (vmem_budget_bytes // per_row) // sub * sub)
    tm = min(tm, tm_max, _round_up(M, sub))

    grid_m = pl.cdiv(M, tm)               # ragged last tile handled by Pallas

    cost = pl.CostEstimate(
        flops=2 * M * K * N,
        bytes_accessed=(M * K * in_itemsize + K * N * in_itemsize
                        + N * 4 + M * N * out_itemsize),
        transcendentals=0,
    )
    compiler_params = pltpu.CompilerParams(
        dimension_semantics=("parallel", "arbitrary") if k_tiled else ("parallel",),
        vmem_limit_bytes=48 * 1024 * 1024,
    )

    if not k_tiled:
        out2d = pl.pallas_call(
            _linear_head_kernel,
            out_shape=jax.ShapeDtypeStruct((M, N), out_dtype),
            grid=(grid_m,),
            in_specs=[
                # Activations stream tile-by-tile along M.
                pl.BlockSpec((tm, K), lambda i: (i, 0)),
                # Weights / bias: constant block index -> resident in VMEM.
                pl.BlockSpec((K, N), lambda i: (0, 0)),
                pl.BlockSpec((1, N), lambda i: (0, 0)),
            ],
            out_specs=pl.BlockSpec((tm, N), lambda i: (i, 0)),
            compiler_params=compiler_params,
            cost_estimate=cost,
        )(x2d, w_c, b2d)
    else:
        out2d = pl.pallas_call(
            _linear_head_kernel_ktiled,
            out_shape=jax.ShapeDtypeStruct((M, N), out_dtype),
            grid=(grid_m, K // tk),
            in_specs=[
                pl.BlockSpec((tm, tk), lambda i, k: (i, k)),
                pl.BlockSpec((tk, N), lambda i, k: (k, 0)),
                pl.BlockSpec((1, N), lambda i, k: (0, 0)),
            ],
            out_specs=pl.BlockSpec((tm, N), lambda i, k: (i, 0)),
            scratch_shapes=[pltpu.VMEM((tm, N), jnp.float32)],
            compiler_params=compiler_params,
            cost_estimate=cost,
        )(x2d, w_c, b2d)

    return out2d.reshape(B, T, N)


if __name__ == "__main__":
    key = jax.random.PRNGKey(0)

    # ---- Test 1: small shapes typical of a distribution head ---------------
    B, T, INPUT_DIM, OUTPUT_DIM = 2, 8, 32, 8
    kx, kw, kb, kx2, kw2, kb2 = jax.random.split(key, 6)

    x = jax.random.normal(kx, (B, T, INPUT_DIM), dtype=jnp.float32)
    w = jax.random.normal(kw, (INPUT_DIM, OUTPUT_DIM), dtype=jnp.float32) * 0.05
    b = jax.random.normal(kb, (OUTPUT_DIM,), dtype=jnp.float32) * 0.01

    y = jax.block_until_ready(base_distribution_head(x, w, b))

    # Reference uses the same bf16-cast operands (f32 accumulation).
    xb = x.astype(jnp.bfloat16).astype(jnp.float32).reshape(B * T, INPUT_DIM)
    wb = w.astype(jnp.bfloat16).astype(jnp.float32)
    ref = (xb @ wb + b).reshape(B, T, OUTPUT_DIM)
    assert y.shape == (B, T, OUTPUT_DIM)
    assert jnp.allclose(y, ref, atol=1e-3, rtol=1e-3)

    # ---- Test 2: exercise the K-tiled (accumulator) path -------------------
    K2, N2 = 256, 8
    x2 = jax.random.normal(kx2, (B, T, K2), dtype=jnp.float32)
    w2 = jax.random.normal(kw2, (K2, N2), dtype=jnp.float32) * 0.05
    b2 = jax.random.normal(kb2, (N2,), dtype=jnp.float32) * 0.01

    y2 = jax.block_until_ready(
        base_distribution_head(x2, w2, b2, tk_max=128))  # forces TK=128, grid_k=2

    x2b = x2.astype(jnp.bfloat16).astype(jnp.float32).reshape(B * T, K2)
    w2b = w2.astype(jnp.bfloat16).astype(jnp.float32)
    ref2 = (x2b @ w2b + b2).reshape(B, T, N2)
    assert y2.shape == (B, T, N2)
    assert jnp.allclose(y2, ref2, atol=1e-3, rtol=1e-3)

    print("KERNEL_OK")
</pallas_src>

<mosaic_0001>
module attributes {stable_mosaic.version = 11 : i64} {
  func.func @_linear_head_kernel(%arg0: i32, %arg1: memref<16x32xbf16, #tpu.memory_space<vmem>>, %arg2: memref<32x8xbf16, #tpu.memory_space<vmem>>, %arg3: memref<1x8xf32, #tpu.memory_space<vmem>>, %arg4: memref<16x8xf32, #tpu.memory_space<vmem>>) attributes {dimension_semantics = [#tpu.dimension_semantics<parallel>], iteration_bounds = array<i64: 1>, scalar_prefetch = 0 : i64, scratch_operands = 0 : i64, tpu.core_type = #tpu.core_type<tc>, window_params = [{transform_indices = @transform_0, window_bounds = array<i64: 16, 32>}, {pipeline_mode = #tpu.pipeline_mode<synchronous>, transform_indices = @transform_1, window_bounds = array<i64: 32, 8>}, {pipeline_mode = #tpu.pipeline_mode<synchronous>, transform_indices = @transform_2, window_bounds = array<i64: 1, 8>}, {transform_indices = @transform_3, window_bounds = array<i64: 16, 8>}]} {
    %c0 = arith.constant 0 : index
    %c0_0 = arith.constant 0 : index
    %0 = vector.load %arg1[%c0, %c0_0] : memref<16x32xbf16, #tpu.memory_space<vmem>>, vector<16x32xbf16>
    %c0_1 = arith.constant 0 : index
    %c0_2 = arith.constant 0 : index
    %1 = vector.load %arg2[%c0_1, %c0_2] : memref<32x8xbf16, #tpu.memory_space<vmem>>, vector<32x8xbf16>
    %cst = arith.constant dense<0.000000e+00> : vector<16x8xf32>
    %2 = tpu.matmul %0, %1, %cst {dimension_numbers = #tpu.dot_dimension_numbers<[1], [0], [0], [1], [0, 0, 1, 1], [], []>} : vector<16x32xbf16>, vector<32x8xbf16>, vector<16x8xf32> -> vector<16x8xf32>
    %c0_3 = arith.constant 0 : index
    %c0_4 = arith.constant 0 : index
    %3 = vector.load %arg3[%c0_3, %c0_4] : memref<1x8xf32, #tpu.memory_space<vmem>>, vector<1x8xf32>
    %4 = vector.broadcast %3 : vector<1x8xf32> to vector<16x8xf32>
    %5 = arith.addf %2, %4 : vector<16x8xf32>
    %c0_5 = arith.constant 0 : index
    %c0_6 = arith.constant 0 : index
    %6 = vector.load %arg4[%c0_5, %c0_6] : memref<16x8xf32, #tpu.memory_space<vmem>>, vector<16x8xf32>
    tpu.vector_store %arg4[%c0_5, %c0_6], %5 {strides = array<i32>} : memref<16x8xf32, #tpu.memory_space<vmem>>, vector<16x8xf32>,
    return
  }
  func.func @transform_0(%arg0: i32) -> (i32, i32) {
    %c0_i32 = arith.constant 0 : i32
    %c0_i32_0 = arith.constant 0 : i32
    return %arg0, %c0_i32 : i32, i32
  }
  func.func @transform_1(%arg0: i32) -> (i32, i32) {
    %c0_i32 = arith.constant 0 : i32
    %c0_i32_0 = arith.constant 0 : i32
    %c0_i32_1 = arith.constant 0 : i32
    return %c0_i32, %c0_i32_0 : i32, i32
  }
  func.func @transform_2(%arg0: i32) -> (i32, i32) {
    %c0_i32 = arith.constant 0 : i32
    %c0_i32_0 = arith.constant 0 : i32
    %c0_i32_1 = arith.constant 0 : i32
    return %c0_i32, %c0_i32_0 : i32, i32
  }
  func.func @transform_3(%arg0: i32) -> (i32, i32) {
    %c0_i32 = arith.constant 0 : i32
    %c0_i32_0 = arith.constant 0 : i32
    return %arg0, %c0_i32 : i32, i32
  }
}

</mosaic_0001>

<bundles_post_ra>
// kernel: tpu_custom_call.1
= control target key start
LH: loop header
LB: loop body
LE: loop exit
PB: predicated region body
PF: predicated region fallthrough
CT: control target
= control target key end

     0   :  { %v118_v0 = vmov 0.0   ;;  %vm119_vm0 = vmmov 0   ;;  %vm45_vm1 = vcmask 261120   ;;  %vm90_vm2 = vcmask 64512   ;;  %s158_s1 = inlined_call_operand.vmem [shape: bf16[32,8], index: 1, kind: input, shape index: {}]   ;;  %s159_s0 = inlined_call_operand.vmem [shape: bf16[16,32], index: 0, kind: input, shape index: {}]   ;;  %s160_s2 = inlined_call_operand.vmem [shape: f32[1,8], index: 2, kind: input, shape index: {}]   ;;  %s161_s3 = inlined_call_operand.vmem [shape: f32[16,8], index: 3, kind: output, shape index: {}]  }
   0x1   :  { %105 = vmatprep.subr.bf16.mxu0 %v118_v0  ;;  %v115_v1 = vld [vmem:[%s158_s1] sm:$0xff]   ;;  %109 = vmatprep.mubr.msk.bf16.mxu0 %vm119_vm0, %v118_v0  ;;  %v116_v2 = vld [vmem:[%s158_s1 + $0x8] sm:$0xff]  }
   0x2   :  { %106 = vmatpush3.bf16.msra.mxu0 %v115_v1  ;;  %v117_v3 = vld [vmem:[%s159_s0] sm:$0xff]  }
   0x3   :  { %107 = vmatprep.subr.bf16.mxu0 %v118_v0  ;;  %v97_v4 = vld [vmem:[%s160_s2] ss:$0 sm:$0xff] }
   0x6   :  { %108 = vmatpush3.bf16.msra.mxu0 %v116_v2 }
   0x9   :  { %110 = vmatmul.mubr.msk.bf16.vlgmr.msra.gmra.mrb[0].mxu0 %vm45_vm1, %v117_v3 }
  0xdc   :  { %v83_v5 = vpop.f32.mrb[0].mxu0 }
  0xdd   :  { %v84_v6 = vadd.f32 %v97_v4, %v83_v5  ;;  %v111_v7 = vpop.f32.mrb[1].mxu0 }
  0xde   :  { %v86_v8 = vpop.f32.mrb[2].mxu0 }
  0xdf   :  { %91 = vst.msk [vmem:[%s161_s3] sm:$0xff] %vm90_vm2, %v84_v6  ;;  %v87_v9 = vadd.f32 %v97_v4, %v86_v8  ;;  %v112_v10 = vpop.f32.mrb[3].mxu0 }
  0xe1   :  { %92 = vst.msk [vmem:[%s161_s3 + $0x8] sm:$0xff] %vm90_vm2, %v87_v9 }

</bundles_post_ra>
